<compile_context>
chip_gen: v5e
topology: v5e:2x2
jax: 0.10.0
libtpu: 0.0.40
codegen_flags: <defaults>
</compile_context>

<pallas_src>
import functools

import numpy as np
import jax
import jax.numpy as jnp
from jax.experimental import pallas as pl
from jax.experimental.pallas import tpu as pltpu


_POOL_SIZES = (32, 16, 8, 4)   # order matches the PyTorch forward / concat order


# ----------------------------------------------------------------------------
# Pallas kernel: one grid step == one batch element.
# ----------------------------------------------------------------------------
def _pf_kernel(w_ref, b_ref, x_ref, ph_ref, pwt_ref, mask_ref, uwt_ref, uhb_ref,
               o_ref, *, c_in, h):
    # w_ref   : SMEM (C,)              shared pf1 conv weight
    # b_ref   : SMEM (1,)              shared pf1 conv bias
    # x_ref   : VMEM (1, C*H, W)       one batch element, channels folded into rows
    # ph_ref  : VMEM (Ht, H)           stacked row block-mean matrices (4 scales)
    # pwt_ref : VMEM (W, Wt)           stacked column block-mean matrices, transposed
    # mask_ref: VMEM (Ht, Wt)          0/1 block-diagonal scale-matching mask
    # uwt_ref : VMEM (Wt, W)           stacked column nearest-up matrices, transposed
    # uhb_ref : VMEM (4H, Ht)          block-diagonal row nearest-up matrices
    # o_ref   : VMEM (1, (C+4)*H, W)   concatenated output, channels folded into rows

    # Pass-through channels out[:, :C] = x : one fat slab store.
    o_ref[0, :c_in * h, :] = x_ref[0].astype(o_ref.dtype)

    # Shared 1x1 conv as a full-resolution channel mix (VPU).  Conv (linear)
    # commutes with avg-pool and the bias passes through the row-stochastic
    # mean matrices exactly, so this equals conv-after-pool.
    y = w_ref[0] * x_ref[0, 0:h, :].astype(jnp.float32) + b_ref[0]
    for c in range(1, c_in):
        y = y + w_ref[c] * x_ref[0, c * h:(c + 1) * h, :].astype(jnp.float32)

    # All four (avg-pool k -> relu -> nearest-upsample) branches in 4 matmuls.
    # t : row block means, all scales stacked                      (Ht, W)
    t = jnp.dot(ph_ref[...], y, preferred_element_type=jnp.float32)
    # z : column block means for every (row-scale, col-scale) pair; ReLU; keep
    #     only the matching diagonal blocks via the 0/1 mask        (Ht, Wt)
    z = jnp.maximum(jnp.dot(t, pwt_ref[...], preferred_element_type=jnp.float32), 0.0)
    z = z * mask_ref[...]
    # r : nearest-upsample along columns (pure replication)         (Ht, W)
    r = jnp.dot(z, uwt_ref[...], preferred_element_type=jnp.float32)
    # b4: nearest-upsample along rows, the four branches stacked    (4H, W)
    b4 = jnp.dot(uhb_ref[...], r, preferred_element_type=jnp.float32)

    # The four branch channels in one contiguous slab store.
    o_ref[0, c_in * h:, :] = b4.astype(o_ref.dtype)


# ----------------------------------------------------------------------------
# Constant construction (numpy, once per shape)
# ----------------------------------------------------------------------------
def _block_mean(size, k):
    """(size//k, size) block-mean matrix (PyTorch floor pooling: tail dropped)."""
    m = size // k
    assert m >= 1, f"spatial size {size} must be >= largest pool size {k}"
    p = np.zeros((m, size), np.float32)
    for i in range(m):
        p[i, i * k:(i + 1) * k] = 1.0 / k
    return p


def _nearest_up(size, k):
    """(size, size//k) nearest-upsample matrix, legacy rule src=floor(dst*in/out)."""
    m = size // k
    u = np.zeros((size, m), np.float32)
    for r in range(size):
        u[r, min(r * m // size, m - 1)] = 1.0
    return u


def _pf_constants(h, w):
    h_sizes = [h // k for k in _POOL_SIZES]
    w_sizes = [w // k for k in _POOL_SIZES]
    h_tot, w_tot = sum(h_sizes), sum(w_sizes)

    ph = np.concatenate([_block_mean(h, k) for k in _POOL_SIZES], axis=0)      # (Ht, H)
    pwt = np.concatenate([_block_mean(w, k).T for k in _POOL_SIZES], axis=1)   # (W, Wt)
    uwt = np.concatenate([_nearest_up(w, k).T for k in _POOL_SIZES], axis=0)   # (Wt, W)

    uhb = np.zeros((len(_POOL_SIZES) * h, h_tot), np.float32)                  # (4H, Ht)
    mask = np.zeros((h_tot, w_tot), np.float32)                                # (Ht, Wt)
    ho = wo = 0
    for s, k in enumerate(_POOL_SIZES):
        hs, ws = h_sizes[s], w_sizes[s]
        uhb[s * h:(s + 1) * h, ho:ho + hs] = _nearest_up(h, k)
        mask[ho:ho + hs, wo:wo + ws] = 1.0
        ho += hs
        wo += ws
    return ph, pwt, mask, uwt, uhb, h_tot, w_tot


# ----------------------------------------------------------------------------
# Wrapper
# ----------------------------------------------------------------------------
def pf_forward(params, x):
    """PF.forward: x (N, 6, H, W) -> (N, 10, H, W)."""
    n, c, h, w = x.shape
    assert c == 6, "PF expects 6 input channels"
    assert h >= max(_POOL_SIZES) and w >= max(_POOL_SIZES), \
        "spatial dims must be >= the largest pool size (32)"

    ph, pwt, mask, uwt, uhb, h_tot, w_tot = _pf_constants(h, w)

    wvec = jnp.asarray(params["pf1"]["w"]).reshape(c).astype(jnp.float32)
    bvec = jnp.asarray(params["pf1"]["b"]).reshape(1).astype(jnp.float32)

    n_out = c + len(_POOL_SIZES)
    out_dtype = x.dtype

    # Fold channels into rows; contiguous (free) reshape, W stays on the lanes.
    x_rows = x.reshape(n, c * h, w)

    # Explicit VMEM budget: double-buffered in/out blocks + resident constants.
    item = np.dtype(out_dtype).itemsize
    block_bytes = 2 * (c * h * w + n_out * h * w) * item
    const_bytes = 4 * (h_tot * h + w * w_tot + h_tot * w_tot + w_tot * w
                       + len(_POOL_SIZES) * h * h_tot)
    vmem_limit = int(min(max(block_bytes + 2 * const_bytes + (8 << 20), 32 << 20),
                         56 << 20))
    # NOTE: for very large H*W a second (row-tile) grid axis would be needed to
    # keep per-step blocks in the 0.5-2 MiB sweet spot; not needed at demo sizes.

    kernel = functools.partial(_pf_kernel, c_in=c, h=h)
    out_rows = pl.pallas_call(
        kernel,
        out_shape=jax.ShapeDtypeStruct((n, n_out * h, w), out_dtype),
        grid=(n,),
        in_specs=[
            pl.BlockSpec(memory_space=pltpu.MemorySpace.SMEM),                 # weight (6,)
            pl.BlockSpec(memory_space=pltpu.MemorySpace.SMEM),                 # bias (1,)
            pl.BlockSpec((1, c * h, w), lambda i: (i, 0, 0)),                  # x rows
            pl.BlockSpec((h_tot, h), lambda i: (0, 0)),                        # Ph stacked
            pl.BlockSpec((w, w_tot), lambda i: (0, 0)),                        # Pw^T stacked
            pl.BlockSpec((h_tot, w_tot), lambda i: (0, 0)),                    # scale mask
            pl.BlockSpec((w_tot, w), lambda i: (0, 0)),                        # Uw^T stacked
            pl.BlockSpec((len(_POOL_SIZES) * h, h_tot), lambda i: (0, 0)),     # Uh blockdiag
        ],
        out_specs=pl.BlockSpec((1, n_out * h, w), lambda i: (i, 0, 0)),
        compiler_params=pltpu.CompilerParams(
            dimension_semantics=("parallel",),      # megacore-shard the batch on v7x
            vmem_limit_bytes=vmem_limit,
        ),
    )(wvec, bvec, x_rows, jnp.asarray(ph), jnp.asarray(pwt), jnp.asarray(mask),
      jnp.asarray(uwt), jnp.asarray(uhb))

    # Free reshape back to the NCHW concatenated layout.
    return out_rows.reshape(n, n_out, h, w)


# ----------------------------------------------------------------------------
# Pure-JAX reference (mirrors the PyTorch op order: pool -> conv -> relu -> up)
# ----------------------------------------------------------------------------
def pf_reference(params, x):
    n, c, h, w = x.shape
    wvec = params["pf1"]["w"].reshape(c)
    b = params["pf1"]["b"].reshape(())
    outs = [x]
    for k in _POOL_SIZES:
        hk, wk = h // k, w // k
        p = x[:, :, :hk * k, :wk * k].reshape(n, c, hk, k, wk, k).mean(axis=(3, 5))
        y = jnp.einsum("nchw,c->nhw", p, wvec)[:, None] + b
        y = jnp.maximum(y, 0.0)
        ridx = (jnp.arange(h) * hk) // h          # legacy nearest: floor(dst*in/out)
        cidx = (jnp.arange(w) * wk) // w
        y = y[:, :, ridx, :][:, :, :, cidx]
        outs.append(y)
    return jnp.concatenate(outs, axis=1)


# ----------------------------------------------------------------------------
# Deterministic parameter construction (PyTorch Conv2d(6, 1, 1) default init).
# pf2/pf3/pf4 mirror the module but, exactly as in the PyTorch forward, only
# pf1 is ever used.
# ----------------------------------------------------------------------------
def make_pf_params(key):
    bound = 1.0 / float(np.sqrt(6.0))             # fan_in = 6 * 1 * 1
    params = {}
    for name in ("pf1", "pf2", "pf3", "pf4"):
        key, kw, kb = jax.random.split(key, 3)
        params[name] = {
            "w": jax.random.uniform(kw, (1, 6, 1, 1), jnp.float32, -bound, bound),
            "b": jax.random.uniform(kb, (1,), jnp.float32, -bound, bound),
        }
    return params


# ----------------------------------------------------------------------------
if __name__ == "__main__":
    key = jax.random.PRNGKey(0)
    kp, kx = jax.random.split(key)
    params = make_pf_params(kp)
    # Small demo shape; W=128 keeps every store lane-dense (kernel also works
    # for any H, W >= 32).
    x = jax.random.uniform(kx, (2, 6, 64, 128), dtype=jnp.float32)   # NCHW

    fwd = jax.jit(pf_forward)
    out = jax.block_until_ready(fwd(params, x))

    assert out.shape == (2, 10, 64, 128), out.shape
    assert bool(jnp.all(jnp.isfinite(out)))

    ref = pf_reference(params, x)
    max_err = float(jnp.max(jnp.abs(out - ref)))
    assert max_err < 1e-4, f"mismatch vs reference: {max_err}"

    print("KERNEL_OK")
</pallas_src>

<mosaic_0001>
module attributes {stable_mosaic.version = 11 : i64} {
  func.func @_pf_kernel(%arg0: i32, %arg1: memref<6xf32, #tpu.memory_space<smem>>, %arg2: memref<1xf32, #tpu.memory_space<smem>>, %arg3: memref<1x384x128xf32, #tpu.memory_space<vmem>>, %arg4: memref<30x64xf32, #tpu.memory_space<vmem>>, %arg5: memref<128x60xf32, #tpu.memory_space<vmem>>, %arg6: memref<30x60xf32, #tpu.memory_space<vmem>>, %arg7: memref<60x128xf32, #tpu.memory_space<vmem>>, %arg8: memref<256x30xf32, #tpu.memory_space<vmem>>, %arg9: memref<1x640x128xf32, #tpu.memory_space<vmem>>) attributes {dimension_semantics = [#tpu.dimension_semantics<parallel>], iteration_bounds = array<i64: 2>, scalar_prefetch = 0 : i64, scratch_operands = 0 : i64, tpu.core_type = #tpu.core_type<tc>, window_params = [{transform_indices = @transform_0, window_bounds = array<i64: 6>}, {transform_indices = @transform_1, window_bounds = array<i64: 1>}, {transform_indices = @transform_2, window_bounds = array<i64: 1, 384, 128>}, {pipeline_mode = #tpu.pipeline_mode<synchronous>, transform_indices = @transform_3, window_bounds = array<i64: 30, 64>}, {pipeline_mode = #tpu.pipeline_mode<synchronous>, transform_indices = @transform_4, window_bounds = array<i64: 128, 60>}, {pipeline_mode = #tpu.pipeline_mode<synchronous>, transform_indices = @transform_5, window_bounds = array<i64: 30, 60>}, {pipeline_mode = #tpu.pipeline_mode<synchronous>, transform_indices = @transform_6, window_bounds = array<i64: 60, 128>}, {pipeline_mode = #tpu.pipeline_mode<synchronous>, transform_indices = @transform_7, window_bounds = array<i64: 256, 30>}, {transform_indices = @transform_8, window_bounds = array<i64: 1, 640, 128>}]} {
    %c0 = arith.constant 0 : index
    %c0_0 = arith.constant 0 : index
    %c0_1 = arith.constant 0 : index
    %0 = vector.load %arg3[%c0, %c0_0, %c0_1] : memref<1x384x128xf32, #tpu.memory_space<vmem>>, vector<1x384x128xf32>
    %1 = vector.shape_cast %0 : vector<1x384x128xf32> to vector<384x128xf32>
    %c0_2 = arith.constant 0 : index
    %c0_3 = arith.constant 0 : index
    %c0_4 = arith.constant 0 : index
    %2 = vector.load %arg9[%c0_2, %c0_3, %c0_4] : memref<1x640x128xf32, #tpu.memory_space<vmem>>, vector<1x384x128xf32>
    %3 = vector.shape_cast %2 : vector<1x384x128xf32> to vector<384x128xf32>
    %4 = vector.shape_cast %1 : vector<384x128xf32> to vector<1x384x128xf32>
    tpu.vector_store %arg9[%c0_2, %c0_3, %c0_4], %4 {strides = array<i32>} : memref<1x640x128xf32, #tpu.memory_space<vmem>>, vector<1x384x128xf32>,
    %c0_5 = arith.constant 0 : index
    %5 = memref.load %arg1[%c0_5] : memref<6xf32, #tpu.memory_space<smem>>
    %c0_6 = arith.constant 0 : index
    %c0_7 = arith.constant 0 : index
    %c0_8 = arith.constant 0 : index
    %6 = vector.load %arg3[%c0_6, %c0_7, %c0_8] : memref<1x384x128xf32, #tpu.memory_space<vmem>>, vector<1x64x128xf32>
    %7 = vector.shape_cast %6 : vector<1x64x128xf32> to vector<64x128xf32>
    %8 = vector.broadcast %5 : f32 to vector<64x128xf32>
    %9 = arith.mulf %8, %7 : vector<64x128xf32>
    %c0_9 = arith.constant 0 : index
    %10 = memref.load %arg2[%c0_9] : memref<1xf32, #tpu.memory_space<smem>>
    %11 = vector.broadcast %10 : f32 to vector<64x128xf32>
    %12 = arith.addf %9, %11 : vector<64x128xf32>
    %c1 = arith.constant 1 : index
    %13 = memref.load %arg1[%c1] : memref<6xf32, #tpu.memory_space<smem>>
    %c0_10 = arith.constant 0 : index
    %c64 = arith.constant 64 : index
    %c0_11 = arith.constant 0 : index
    %14 = vector.load %arg3[%c0_10, %c64, %c0_11] : memref<1x384x128xf32, #tpu.memory_space<vmem>>, vector<1x64x128xf32>
    %15 = vector.shape_cast %14 : vector<1x64x128xf32> to vector<64x128xf32>
    %16 = vector.broadcast %13 : f32 to vector<64x128xf32>
    %17 = arith.mulf %16, %15 : vector<64x128xf32>
    %18 = arith.addf %12, %17 : vector<64x128xf32>
    %c2 = arith.constant 2 : index
    %19 = memref.load %arg1[%c2] : memref<6xf32, #tpu.memory_space<smem>>
    %c0_12 = arith.constant 0 : index
    %c128 = arith.constant 128 : index
    %c0_13 = arith.constant 0 : index
    %20 = vector.load %arg3[%c0_12, %c128, %c0_13] : memref<1x384x128xf32, #tpu.memory_space<vmem>>, vector<1x64x128xf32>
    %21 = vector.shape_cast %20 : vector<1x64x128xf32> to vector<64x128xf32>
    %22 = vector.broadcast %19 : f32 to vector<64x128xf32>
    %23 = arith.mulf %22, %21 : vector<64x128xf32>
    %24 = arith.addf %18, %23 : vector<64x128xf32>
    %c3 = arith.constant 3 : index
    %25 = memref.load %arg1[%c3] : memref<6xf32, #tpu.memory_space<smem>>
    %c0_14 = arith.constant 0 : index
    %c192 = arith.constant 192 : index
    %c0_15 = arith.constant 0 : index
    %26 = vector.load %arg3[%c0_14, %c192, %c0_15] : memref<1x384x128xf32, #tpu.memory_space<vmem>>, vector<1x64x128xf32>
    %27 = vector.shape_cast %26 : vector<1x64x128xf32> to vector<64x128xf32>
    %28 = vector.broadcast %25 : f32 to vector<64x128xf32>
    %29 = arith.mulf %28, %27 : vector<64x128xf32>
    %30 = arith.addf %24, %29 : vector<64x128xf32>
    %c4 = arith.constant 4 : index
    %31 = memref.load %arg1[%c4] : memref<6xf32, #tpu.memory_space<smem>>
    %c0_16 = arith.constant 0 : index
    %c256 = arith.constant 256 : index
    %c0_17 = arith.constant 0 : index
    %32 = vector.load %arg3[%c0_16, %c256, %c0_17] : memref<1x384x128xf32, #tpu.memory_space<vmem>>, vector<1x64x128xf32>
    %33 = vector.shape_cast %32 : vector<1x64x128xf32> to vector<64x128xf32>
    %34 = vector.broadcast %31 : f32 to vector<64x128xf32>
    %35 = arith.mulf %34, %33 : vector<64x128xf32>
    %36 = arith.addf %30, %35 : vector<64x128xf32>
    %c5 = arith.constant 5 : index
    %37 = memref.load %arg1[%c5] : memref<6xf32, #tpu.memory_space<smem>>
    %c0_18 = arith.constant 0 : index
    %c320 = arith.constant 320 : index
    %c0_19 = arith.constant 0 : index
    %38 = vector.load %arg3[%c0_18, %c320, %c0_19] : memref<1x384x128xf32, #tpu.memory_space<vmem>>, vector<1x64x128xf32>
    %39 = vector.shape_cast %38 : vector<1x64x128xf32> to vector<64x128xf32>
    %40 = vector.broadcast %37 : f32 to vector<64x128xf32>
    %41 = arith.mulf %40, %39 : vector<64x128xf32>
    %42 = arith.addf %36, %41 : vector<64x128xf32>
    %c0_20 = arith.constant 0 : index
    %c0_21 = arith.constant 0 : index
    %43 = vector.load %arg4[%c0_20, %c0_21] : memref<30x64xf32, #tpu.memory_space<vmem>>, vector<30x64xf32>
    %cst = arith.constant dense<0.000000e+00> : vector<30x128xf32>
    %44 = tpu.matmul %43, %42, %cst {dimension_numbers = #tpu.dot_dimension_numbers<[1], [0], [0], [1], [0, 0, 1, 1], [], []>} : vector<30x64xf32>, vector<64x128xf32>, vector<30x128xf32> -> vector<30x128xf32>
    %c0_22 = arith.constant 0 : index
    %c0_23 = arith.constant 0 : index
    %45 = vector.load %arg5[%c0_22, %c0_23] : memref<128x60xf32, #tpu.memory_space<vmem>>, vector<128x60xf32>
    %cst_24 = arith.constant dense<0.000000e+00> : vector<30x60xf32>
    %46 = tpu.matmul %44, %45, %cst_24 {dimension_numbers = #tpu.dot_dimension_numbers<[1], [0], [0], [1], [0, 0, 1, 1], [], []>} : vector<30x128xf32>, vector<128x60xf32>, vector<30x60xf32> -> vector<30x60xf32>
    %cst_25 = arith.constant 0.000000e+00 : f32
    %47 = vector.broadcast %cst_25 : f32 to vector<30x60xf32>
    %48 = arith.maximumf %46, %47 : vector<30x60xf32>
    %c0_26 = arith.constant 0 : index
    %c0_27 = arith.constant 0 : index
    %49 = vector.load %arg6[%c0_26, %c0_27] : memref<30x60xf32, #tpu.memory_space<vmem>>, vector<30x60xf32>
    %50 = arith.mulf %48, %49 : vector<30x60xf32>
    %c0_28 = arith.constant 0 : index
    %c0_29 = arith.constant 0 : index
    %51 = vector.load %arg7[%c0_28, %c0_29] : memref<60x128xf32, #tpu.memory_space<vmem>>, vector<60x128xf32>
    %cst_30 = arith.constant dense<0.000000e+00> : vector<30x128xf32>
    %52 = tpu.matmul %50, %51, %cst_30 {dimension_numbers = #tpu.dot_dimension_numbers<[1], [0], [0], [1], [0, 0, 1, 1], [], []>} : vector<30x60xf32>, vector<60x128xf32>, vector<30x128xf32> -> vector<30x128xf32>
    %c0_31 = arith.constant 0 : index
    %c0_32 = arith.constant 0 : index
    %53 = vector.load %arg8[%c0_31, %c0_32] : memref<256x30xf32, #tpu.memory_space<vmem>>, vector<256x30xf32>
    %cst_33 = arith.constant dense<0.000000e+00> : vector<256x128xf32>
    %54 = tpu.matmul %53, %52, %cst_33 {dimension_numbers = #tpu.dot_dimension_numbers<[1], [0], [0], [1], [0, 0, 1, 1], [], []>} : vector<256x30xf32>, vector<30x128xf32>, vector<256x128xf32> -> vector<256x128xf32>
    %c0_34 = arith.constant 0 : index
    %c384 = arith.constant 384 : index
    %c0_35 = arith.constant 0 : index
    %55 = vector.load %arg9[%c0_34, %c384, %c0_35] : memref<1x640x128xf32, #tpu.memory_space<vmem>>, vector<1x256x128xf32>
    %56 = vector.shape_cast %55 : vector<1x256x128xf32> to vector<256x128xf32>
    %57 = vector.shape_cast %54 : vector<256x128xf32> to vector<1x256x128xf32>
    tpu.vector_store %arg9[%c0_34, %c384, %c0_35], %57 {strides = array<i32>} : memref<1x640x128xf32, #tpu.memory_space<vmem>>, vector<1x256x128xf32>,
    return
  }
  func.func @transform_0(%arg0: i32) -> i32 {
    %c0_i32 = arith.constant 0 : i32
    %c0_i32_0 = arith.constant 0 : i32
    return %c0_i32 : i32
  }
  func.func @transform_1(%arg0: i32) -> i32 {
    %c0_i32 = arith.constant 0 : i32
    %c0_i32_0 = arith.constant 0 : i32
    return %c0_i32 : i32
  }
  func.func @transform_2(%arg0: i32) -> (i32, i32, i32) {
    %c0_i32 = arith.constant 0 : i32
    %c0_i32_0 = arith.constant 0 : i32
    %c0_i32_1 = arith.constant 0 : i32
    return %arg0, %c0_i32, %c0_i32_0 : i32, i32, i32
  }
  func.func @transform_3(%arg0: i32) -> (i32, i32) {
    %c0_i32 = arith.constant 0 : i32
    %c0_i32_0 = arith.constant 0 : i32
    %c0_i32_1 = arith.constant 0 : i32
    return %c0_i32, %c0_i32_0 : i32, i32
  }
  func.func @transform_4(%arg0: i32) -> (i32, i32) {
    %c0_i32 = arith.constant 0 : i32
    %c0_i32_0 = arith.constant 0 : i32
    %c0_i32_1 = arith.constant 0 : i32
    return %c0_i32, %c0_i32_0 : i32, i32
  }
  func.func @transform_5(%arg0: i32) -> (i32, i32) {
    %c0_i32 = arith.constant 0 : i32
    %c0_i32_0 = arith.constant 0 : i32
    %c0_i32_1 = arith.constant 0 : i32
    return %c0_i32, %c0_i32_0 : i32, i32
  }
  func.func @transform_6(%arg0: i32) -> (i32, i32) {
    %c0_i32 = arith.constant 0 : i32
    %c0_i32_0 = arith.constant 0 : i32
    %c0_i32_1 = arith.constant 0 : i32
    return %c0_i32, %c0_i32_0 : i32, i32
  }
  func.func @transform_7(%arg0: i32) -> (i32, i32) {
    %c0_i32 = arith.constant 0 : i32
    %c0_i32_0 = arith.constant 0 : i32
    %c0_i32_1 = arith.constant 0 : i32
    return %c0_i32, %c0_i32_0 : i32, i32
  }
  func.func @transform_8(%arg0: i32) -> (i32, i32, i32) {
    %c0_i32 = arith.constant 0 : i32
    %c0_i32_0 = arith.constant 0 : i32
    %c0_i32_1 = arith.constant 0 : i32
    return %arg0, %c0_i32, %c0_i32_0 : i32, i32, i32
  }
}

</mosaic_0001>

<bundles_post_ra>
// kernel: pf_forward.1
= control target key start
LH: loop header
LB: loop body
LE: loop exit
PB: predicated region body
PF: predicated region fallthrough
CT: control target
= control target key end

     0   :  { %s2427_s0 = inlined_call_operand.vmem [shape: f32[6], index: 0, kind: input, shape index: {}]   ;;  %s2428_s1 = inlined_call_operand.<no memory space> [shape: f32[1], index: 1, kind: input, shape index: {}]   ;;  %s2429_s2 = inlined_call_operand.hbm [shape: f32[2,384,128], index: 2, kind: input, shape index: {}]   ;;  %s2430_s3 = inlined_call_operand.hbm [shape: f32[30,64], index: 3, kind: input, shape index: {}]   ;;  %s2431_s4 = inlined_call_operand.hbm [shape: f32[128,60], index: 4, kind: input, shape index: {}]   ;;  %s2432_s5 = inlined_call_operand.hbm [shape: f32[30,60], index: 5, kind: input, shape index: {}]   ;;  %s2433_s6 = inlined_call_operand.hbm [shape: f32[60,128], index: 6, kind: input, shape index: {}]   ;;  %s2434_s7 = inlined_call_operand.hbm [shape: f32[256,30], index: 7, kind: input, shape index: {}]   ;;  %s2435_s8 = inlined_call_operand.hbm [shape: f32[2,640,128], index: 8, kind: output, shape index: {}]  }
   0x1   :  { %2446 = sst [smem:[#allocation31_spill]] %s2427_s0 }
   0x2   :  { %2447 = sst [smem:[#allocation32_spill]] %s2430_s3 }
   0x3   :  { %2448 = sst [smem:[#allocation33_spill]] %s2431_s4 }
   0x4   :  { %13 = sst [smem:[#allocation2]] %s2428_s1 }
   0x5   :  { %14 = vsyncpa [#allocation6], 0 }
   0x6   :  { %15 = vsyncpa [#allocation4], 0 }
   0x7   :  { %17 = vsyncpa [#allocation4 + $0x1], 0 }
   0x8   :  { %18 = vsyncpa [#allocation9], 0 }
   0x9   :  { %19 = vsyncpa [#allocation12], 0 }
   0xa   :  { %20 = vsyncpa [#allocation15], 0 }
   0xb   :  { %21 = vsyncpa [#allocation5], 0 }
   0xc   :  { %23 = vsyncpa [#allocation5 + $0x1], 0  ;;  %s1794_s29 = smov 0   ;;  %s1796_s30 = smov 0  }
   0xd   :  { %s1798_s9 = smov 0   ;;  %s1800_s10 = smov 0  }
   0xe LB: > { %s2449_s3 = sld [smem:[#allocation32_spill]]  ;;  %s1818_s13 = sadd.s32 4294967295, %s1734_s10   ;;  %s1734_s10 = sphi %s1800_s10, %s2480_s10   ;;  %s1730_s9 = sphi %s1798_s9, %s2479_s9   ;;  %s1726_s30 = sphi %s1796_s30, %s2478_s30   ;;  %s1722_s29 = sphi %s1794_s29, %s2477_s29  }
   0xf   : > { %p1263_p0 = scmp.ge.s32.totalorder %s1734_s10, 1  ;;  %p92_p1 = scmp.eq.s32.totalorder %s1818_s13, 0 }
  0x10   : > { %p233_p2 = scmp.lt.s32.totalorder %s1734_s10, 3  ;;  %s1736_s15 = smov [#allocation8]  }
  0x11   : > { %s259_s16 = sshll.u32 %s1736_s15, 4  ;;  %s285_s19 = sshll.u32 %s2432_s5, 4  ;;  %s260_s16 = int_to_ptr.vmem [resolvable:$true] %s259_s16  ;;  %s286_s19 = int_to_ptr.hbm [resolvable:$true] %s285_s19 }
  0x12   : > { %p1823_p3 = pnand %p1263_p0, %p233_p2  ;;  %s2452_s0 = sld [smem:[#allocation31_spill]] }
  0x13   : > { %s1737_s24 = smov [#allocation11]   ;;  %s2436_s26 = smov 128  }
  0x14   : > { %s257_s12 = sshll.u32 %s2449_s3, 4  ;;  %p1374_p4 = pneg %p1823_p3  ;;  %s258_s12 = int_to_ptr.hbm [resolvable:$true] %s257_s12 }
  0x15   : > { %s287_s25 = sshll.u32 %s1737_s24, 4  ;;  %s2437_s27 = smov 8   ;;  %s288_s25 = int_to_ptr.vmem [resolvable:$true] %s287_s25 }
  0x16   : > { %p1835_p6 = pnand %p1374_p4, %p92_p1  ;;  %s2453_s4 = sld [smem:[#allocation33_spill]] }
  0x17   : > { %s1740_s15 = smov [#allocation3]   ;;  %s1741_s17 = smov [#allocation10]  }
  0x18   : > { %s245_s23 = sshll.u32 %s2452_s0, 4  ;;  %s299_s21 = sshll.u32 %s2433_s6, 4  ;;  %s246_s23 = int_to_ptr.vmem [resolvable:$true] %s245_s23  ;;  %s300_s21 = int_to_ptr.hbm [resolvable:$true] %s299_s21 }
  0x19   : > { %1380 = dma.hbm_to_vmem [thread:$0]  (!%p1835_p6), %s258_s12, 512, %s260_s16, [#allocation9], %s2436_s26, %s2436_s26, %s2437_s27  }
  0x1a   : > { %1386 = dma.hbm_to_vmem [thread:$0]  (!%p1835_p6), %s286_s19, 512, %s288_s25, [#allocation12], %s2436_s26, %s2436_s26, %s2437_s27  }
  0x1b   : > { %1377 = dma.vmem_to_smem (!%p1835_p6), %s246_s23, 16, %s1740_s15, [#allocation6]  }
  0x1c   : > { %s271_s11 = sshll.u32 %s2453_s4, 4  ;;  %s273_s12 = sshll.u32 %s1741_s17, 4  ;;  %s272_s11 = int_to_ptr.hbm [resolvable:$true] %s271_s11  ;;  %s274_s12 = int_to_ptr.vmem [resolvable:$true] %s273_s12 }
  0x1d   : > { %1383 = dma.hbm_to_vmem [thread:$0]  (!%p1835_p6), %s272_s11, 2048, %s274_s12, [#allocation9], %s2436_s26, %s2436_s26, %s2437_s27  }
  0x1e   : > { %s313_s23 = sshll.u32 %s2434_s7, 4  ;;  %s1742_s24 = smov [#allocation13]   ;;  %s314_s23 = int_to_ptr.hbm [resolvable:$true] %s313_s23 }
  0x1f   : > { %s301_s25 = sshll.u32 %s1742_s24, 4  ;;  %s1743_s28 = smov [#allocation14]   ;;  %s302_s25 = int_to_ptr.vmem [resolvable:$true] %s301_s25 }
  0x20   : > { %1389 = dma.hbm_to_vmem [thread:$0]  (!%p1835_p6), %s300_s21, 1024, %s302_s25, [#allocation12], %s2436_s26, %s2436_s26, %s2437_s27  }
  0x21   : > { %s315_s1 = sshll.u32 %s1743_s28, 4  ;;  %s1262_s11 = sadd.s32 4294967294, %s1734_s10   ;;  %s316_s1 = int_to_ptr.vmem [resolvable:$true] %s315_s1 }
  0x22   : > { %1392 = dma.hbm_to_vmem [thread:$0]  (!%p1835_p6), %s314_s23, 4096, %s316_s1, [#allocation15], %s2436_s26, %s2436_s26, %s2437_s27  }
  0x23   : > { %s1880_s15 = sadd.s32 1, %s1734_s10   ;;  %s78_s12 = sadd.s32 1, %s1730_s9 }
  0x24   : > { %s75_s17 = ssub.s32 %s1734_s10, %s1880_s15  ;;  %p85_p8 = scmp.ne.s32.totalorder %s1730_s9, %s1726_s30 }
  0x25   : > { %p76_p7 = scmp.eq.s32.totalorder %s75_s17, 0  ;;  %p86_p9 = scmp.eq.s32.totalorder %s1734_s10, 0 }
  0x26   : > { %p91_p10 = scmp.ne.s32.totalorder %s1726_s30, %s1722_s29  ;;  %p220_p13 = scmp.eq.s32.totalorder %s1818_s13, 1 }
  0x27   : > { %s1891_s16 = scalar_select %p76_p7, %s1730_s9, %s78_s12  }
  0x28   : > { %p87_p11 = por %p86_p9, %p85_p8  ;;  %p1895_p12 = por %p92_p1, %p91_p10 }
  0x29   : > { %p226_p0 = scmp.eq.s32.totalorder %s1262_s11, 1  ;;  %p1407_p2 = scmp.lt.s32.totalorder %s1734_s10, 2 }
  0x2a   : > { %s329_s18 = sand.u32 1, %s1730_s9   ;;  %p1902_p4 = por %p220_p13, %p85_p8 }
  0x2b   : > { %p1906_p6 = por %p226_p0, %p91_p10  ;;  %s1341_s22 = smul.u32 384, %s329_s18 }
  0x2c   : > { %s1342_s23 = smul.u32 384, %s1734_s10  ;;  %p1911_p7 = pnand %p1407_p2, %p87_p11 }
  0x2d   : > { %s333_s11 = scalar_lea.vmem [#allocation7], %s1341_s22  ;;  %s330_s26 = scalar_lea.sflag [#allocation4], %s329_s18 }
  0x2e   : > { %s338_s1 = scalar_lea.hbm %s2429_s2, %s1342_s23  ;;  %s341_s17 = sshll.u32 %s333_s11, 4  ;;  %s342_s17 = int_to_ptr.vmem [resolvable:$true] %s341_s17 }
  0x2f   : > { %s339_s12 = sshll.u32 %s338_s1, 4  ;;  %p1626_p9 = pneg %p1911_p7  ;;  %s340_s12 = int_to_ptr.hbm [resolvable:$true] %s339_s12 }
  0x30   : > { %s1622_s27 = sshra.s32 %s340_s12, 4  ;;  %s1629_s25 = scalar_lea.hbm %s2429_s2, 768  ;;  %s1623_s27 = int_to_ptr.hbm [resolvable:$true] %s1622_s27 }
  0x31   : > { %s1624_s0 = scalar_lea.hbm %s1623_s27, 384  ;;  %p1630_p13 = scmp.lt.s32.totalorder %s1623_s27, %s2429_s2 }
  0x32   : > { %p1625_p8 = scmp.ne.s32.totalorder %s1623_s27, %s1624_s0  ;;  %p1631_p0 = scmp.lt.s32.totalorder %s1629_s25, %s1624_s0 }
  0x34   : > { %p1627_p10 = pnand %p1626_p9, %p1625_p8  ;;  %p1632_p2 = por %p1631_p0, %p1630_p13 }
  0x36   : > { %p1628_p11 = pneg %p1627_p10 }
  0x38   : > { %p1633_p5 = pnand %p1632_p2, %p1628_p11 }
  0x3a   : > { %1636 = shalt.err (!%p1633_p5)
}
  0x3b   : > { %s2458_s18 = smov 8   ;;  %s2459_s22 = smov 128  }
  0x3c   : > { %1396 = dma.hbm_to_vmem [thread:$0]  (!%p1911_p7), %s340_s12, 6144, %s342_s17, %s330_s26, %s2459_s22, %s2459_s22, %s2458_s18  }
  0x3d   : > { %353 = sbr.rel (%p1823_p3) target bundleno = 760 (0x2f8), region = 52 }
  0x42   : > { %1697 = dma.done.wait (%p92_p1), [#allocation6], 16  }
  0x43   : > { %1699 = vsyncadd (%p92_p1), [#allocation6], 4294967280  ;;  %s1938_s0 = sand.u32 1, %s1726_s30  }
  0x44   : > { %s1343_s3 = smul.u32 384, %s1938_s0  ;;  %s361_s4 = scalar_lea.sflag [#allocation4], %s1938_s0 }
  0x46   : > { %s1942_s27 = scalar_lea.vmem [#allocation7], %s1343_s3 }
  0x47   : > { %1701 = dma.done.wait (%p1895_p12), %s361_s4, 6144  }
  0x48   : > { %1703 = vsyncadd (%p1895_p12), %s361_s4, 4294961152 }
  0x49   : > { %1705 = dma.done.wait (%p92_p1), [#allocation9], 2560  }
  0x4a   : > { %1707 = vsyncadd (%p92_p1), [#allocation9], 4294964736 }
  0x4b   : > { %1709 = dma.done.wait (%p92_p1), [#allocation12], 1536  }
  0x4c   : > { %1711 = vsyncadd (%p92_p1), [#allocation12], 4294965760 }
  0x4d   : > { %1713 = dma.done.wait (%p92_p1), [#allocation15], 4096  }
  0x4e   : > { %1715 = vsyncadd (%p92_p1), [#allocation15], 4294963200 }
  0x4f   : > { %395 = sfence }
  0x50   : > { %s520_s14 = sld [smem:[#allocation3]]  ;;  %v1961_v0 = vld [vmem:[%s1942_s27 + $0x38] sm:$0xff]  ;;  %v1964_v1 = vld [vmem:[%s1942_s27 + $0x30] sm:$0xff]  ;;  %v1967_v2 = vld [vmem:[%s1942_s27 + $0x28] sm:$0xff]  ;;  %vm682_vm0 = vcmask 523264   ;;  %vm802_vm1 = vcmask 1043456  }
  0x51   : > { %s538_s26 = sld [smem:[#allocation2]]  ;;  %v1972_v4 = vld [vmem:[%s1942_s27 + $0x78] sm:$0xff]  ;;  %v1984_v9 = vld [vmem:[%s1942_s27 + $0x70] sm:$0xff]  ;;  %v1997_v14 = vld [vmem:[%s1942_s27 + $0x20] sm:$0xff]  ;;  %vm789_vm2 = vcmask 490496   ;;  %s1344_s12 = smul.u32 640, %s1938_s0 }
  0x52   : > { %s1279_s20 = sld [smem:[#allocation3 + $0x1]]  ;;  %v1979_v7 = vld [vmem:[%s1942_s27 + $0xb8] sm:$0xff]  ;;  %v1987_v10 = vld [vmem:[%s1942_s27 + $0xb0] sm:$0xff]  ;;  %v2030_v30 = vld [vmem:[%s1942_s27 + $0x68] sm:$0xff]  ;;  %vm964_vm3 = vcmask 1045504   ;;  %vm867_vm4 = vcmask 244736  }
  0x53   : > { %s1280_s24 = sld [smem:[#allocation3 + $0x2]]  ;;  %v1992_v12 = vld [vmem:[%s1942_s27 + $0xf8] sm:$0xff]  ;;  %v2006_v19 = vld [vmem:[%s1942_s27 + $0xf0] sm:$0xff]  ;;  %v2033_v31 = vld [vmem:[%s1942_s27 + $0xa8] sm:$0xff]  ;;  %s2231_s25 = scalar_lea.vmem [#allocation16], %s1344_s12 }
  0x54   : > { %s1281_s1 = sld [smem:[#allocation3 + $0x3]]  ;;  %v2013_v22 = vld [vmem:[%s1942_s27 + $0x138] sm:$0xff]  ;;  %v2020_v25 = vld [vmem:[%s1942_s27 + $0x130] sm:$0xff]  ;;  %v2045_v37 = vld [vmem:[%s1942_s27 + $0xe8] sm:$0xff]  ;;  %476 = vst [vmem:[%s2231_s25 + $0x20] sm:$0xff] %v1997_v14  ;;  %s1345_s28 = smul.u32 640, %s1818_s13 }
  0x55   : > { %s1282_s11 = sld [smem:[#allocation3 + $0x4]]  ;;  %2460 = vst [vmem:[#allocation23_spill] sm:$0xff] %v2013_v22  ;;  %v2027_v29 = vld [vmem:[%s1942_s27 + $0x178] sm:$0xff]  ;;  %v2042_v36 = vld [vmem:[%s1942_s27 + $0x170] sm:$0xff]  ;;  %v2053_v42 = vld [vmem:[%s1942_s27 + $0x60] sm:$0xff]  ;;  %s1126_s3 = sshll.u32 %s2231_s25, 4  ;;  %s1127_s3 = int_to_ptr.vmem [resolvable:$true] %s1126_s3 }
  0x56   : > { %v1969_v3 = vstv %s520_s14  ;;  %s1283_s17 = sld [smem:[#allocation3 + $0x5]]  ;;  %2461 = vst [vmem:[#allocation24_spill] sm:$0xff] %v2020_v25  ;;  %v2056_v43 = vld [vmem:[%s1942_s27 + $0xa0] sm:$0xff]  ;;  %v2065_v48 = vld [vmem:[%s1942_s27 + $0x128] sm:$0xff]  ;;  %v2079_v55 = vld [vmem:[%s1942_s27 + $0x18] sm:$0xff]  ;;  %s1125_s22 = scalar_lea.hbm %s2435_s8, %s1345_s28 }
  0x57   : > { %v537_v5 = vmul.f32 %v1969_v3, %v1961_v0  ;;  %v1976_v6 = vstv %s538_s26  ;;  %v536_v8 = vmul.f32 %v1969_v3, %v1964_v1  ;;  %v535_v13 = vmul.f32 %v1969_v3, %v1967_v2  ;;  %2462 = vst [vmem:[#allocation25_spill] sm:$0xff] %v2027_v29  ;;  %v2068_v49 = vld [vmem:[%s1942_s27 + $0x168] sm:$0xff]  ;;  %v2071_v50 = vld [vmem:[%s1942_s27 + $0xe0] sm:$0xff]  ;;  %v2089_v61 = vld [vmem:[%s1942_s27 + $0x58] sm:$0xff]  ;;  %s1128_s4 = sshll.u32 %s1125_s22, 4  ;;  %s1129_s4 = int_to_ptr.hbm [resolvable:$true] %s1128_s4 }
  0x58   : > { %v1989_v11 = vstv %s1279_s20  ;;  %v534_v32 = vmul.f32 %v1969_v3, %v1997_v14  ;;  %2463 = vst [vmem:[#allocation26_spill] sm:$0xff] %v2042_v36  ;;  %v2086_v60 = vld [vmem:[%s1942_s27 + $0x120] sm:$0xff]  ;;  %v2092_v62 = vld [vmem:[%s1942_s27 + $0x98] sm:$0xff]  ;;  %s1666_s14 = sshra.s32 %s1129_s4, 4  ;;  %s1667_s14 = int_to_ptr.hbm [resolvable:$true] %s1666_s14 }
  0x59   : > { %v547_v15 = vadd.f32 %v1976_v6, %v537_v5  ;;  %v565_v16 = vmul.f32 %v1989_v11, %v1972_v4  ;;  %v2002_v17 = vstv %s1280_s24  ;;  %v546_v18 = vadd.f32 %v1976_v6, %v536_v8  ;;  %2464 = vst [vmem:[#allocation27_spill] sm:$0xff] %v2068_v49  ;;  %s1668_s13 = scalar_lea.hbm %s1667_s14, 640  ;;  %s1672_s24 = scalar_lea.hbm %s2435_s8, 1280 }
  0x5a   : > { %v591_v20 = vmul.f32 %v2002_v17, %v1979_v7  ;;  %v2010_v21 = vstv %s1281_s1  ;;  %v564_v23 = vmul.f32 %v1989_v11, %v1984_v9  ;;  %v590_v24 = vmul.f32 %v2002_v17, %v1987_v10  ;;  %475 = vst [vmem:[%s2231_s25 + $0x18] sm:$0xff] %v2079_v55  ;;  %p1669_p1 = scmp.ne.s32.totalorder %s1667_s14, %s1668_s13  ;;  %p1673_p12 = scmp.lt.s32.totalorder %s1667_s14, %s2435_s8 }
  0x5b   : > { %v573_v26 = vadd.f32 %v565_v16, %v547_v15  ;;  %v617_v27 = vmul.f32 %v2010_v21, %v1992_v12  ;;  %v2024_v28 = vstv %s1282_s11  ;;  %v616_v35 = vmul.f32 %v2010_v21, %v2006_v19  ;;  %477 = vst [vmem:[%s2231_s25 + $0x28] sm:$0xff] %v1967_v2  ;;  %v843_v2 = vld [vmem:[#allocation14 + $0x40] sm:$0xff]  ;;  %p1674_p7 = scmp.lt.s32.totalorder %s1672_s24, %s1668_s13 }
  0x5c   : > { %v2037_v33 = vstv %s1283_s17  ;;  %v572_v34 = vadd.f32 %v564_v23, %v546_v18  ;;  %v643_v39 = vmul.f32 %v2024_v28, %v2013_v22  ;;  %v642_v40 = vmul.f32 %v2024_v28, %v2020_v25  ;;  %v2201_v22 = vld [vmem:[%s1942_s27 + $0x148] sm:$0xff]  ;;  %478 = vst [vmem:[%s2231_s25 + $0x30] sm:$0xff] %v1964_v1  ;;  %p1670_p3 = pnand %p1669_p1, %p1902_p4 }
  0x5d   : > { %v599_v38 = vadd.f32 %v591_v20, %v573_v26  ;;  %v545_v41 = vadd.f32 %v1976_v6, %v535_v13  ;;  %v669_v44 = vmul.f32 %v2037_v33, %v2027_v29  ;;  %v563_v46 = vmul.f32 %v1989_v11, %v2030_v30  ;;  %v2101_v20 = vld [vmem:[%s1942_s27 + $0x160] sm:$0xff]  ;;  %v2109_v26 = vld [vmem:[%s1942_s27 + $0x50] sm:$0xff]  ;;  %479 = vst [vmem:[%s2231_s25 + $0x38] sm:$0xff] %v1961_v0  ;;  %p1675_p8 = por %p1674_p7, %p1673_p12 }
  0x5e   : > { %v598_v45 = vadd.f32 %v590_v24, %v572_v34  ;;  %v589_v47 = vmul.f32 %v2002_v17, %v2033_v31  ;;  %v668_v52 = vmul.f32 %v2037_v33, %v2042_v36  ;;  %v615_v53 = vmul.f32 %v2010_v21, %v2045_v37  ;;  %2465 = vst [vmem:[#allocation28_spill] sm:$0xff] %v2101_v20  ;;  %v2106_v24 = vld [vmem:[%s1942_s27 + $0x10] sm:$0xff]  ;;  %p1671_p5 = pneg %p1670_p3 }
  0x5f   : > { %v625_v51 = vadd.f32 %v617_v27, %v599_v38  ;;  %v544_v54 = vadd.f32 %v1976_v6, %v534_v32  ;;  %v571_v57 = vadd.f32 %v563_v46, %v545_v41  ;;  %v562_v58 = vmul.f32 %v1989_v11, %v2053_v42  ;;  %v2118_v38 = vld [vmem:[%s1942_s27 + $0xd8] sm:$0xff]  ;;  %v2125_v46 = vld [vmem:[%s1942_s27 + $0x90] sm:$0xff]  ;;  %474 = vst [vmem:[%s2231_s25 + $0x10] sm:$0xff] %v2106_v24 }
  0x60   : > { %v624_v56 = vadd.f32 %v616_v35, %v598_v45  ;;  %v588_v59 = vmul.f32 %v2002_v17, %v2056_v43  ;;  %v641_v5 = vmul.f32 %v2024_v28, %v2065_v48  ;;  %v667_v8 = vmul.f32 %v2037_v33, %v2068_v49  ;;  %482 = vst [vmem:[%s2231_s25 + $0x50] sm:$0xff] %v2109_v26  ;;  %p1676_p9 = pnand %p1675_p8, %p1671_p5 }
  0x61   : > { %v651_v63 = vadd.f32 %v643_v39, %v625_v51  ;;  %v614_v13 = vmul.f32 %v2010_v21, %v2071_v50  ;;  %v597_v16 = vadd.f32 %v589_v47, %v571_v57  ;;  %v570_v18 = vadd.f32 %v562_v58, %v544_v54  ;;  %483 = vst [vmem:[%s2231_s25 + $0x58] sm:$0xff] %v2089_v61 }
  0x62   : > { %v650_v15 = vadd.f32 %v642_v40, %v624_v56  ;;  %v533_v23 = vmul.f32 %v1969_v3, %v2079_v55  ;;  %v640_v32 = vmul.f32 %v2024_v28, %v2086_v60  ;;  %v561_v34 = vmul.f32 %v1989_v11, %v2089_v61  ;;  %484 = vst [vmem:[%s2231_s25 + $0x60] sm:$0xff] %v2053_v42  ;;  %v2473_v42 = vld [vmem:[#allocation27_spill] sm:$0xff]  ;;  %v836_v55 = vld [vmem:[#allocation14 + $0x8] sm:$0xff]  ;;  %v858_v61 = vld [vmem:[#allocation14 + $0xb8] sm:$0xff] }
  0x63   : > { %v677_v27 = vadd.f32 %v669_v44, %v651_v63  ;;  %v587_v35 = vmul.f32 %v2002_v17, %v2092_v62  ;;  %v623_v40 = vadd.f32 %v615_v53, %v597_v16  ;;  %v596_v41 = vadd.f32 %v588_v59, %v570_v18  ;;  %v2122_v44 = vld [vmem:[%s1942_s27 + $0x118] sm:$0xff]  ;;  %v2134_v53 = vld [vmem:[%s1942_s27 + $0x8] sm:$0xff]  ;;  %v2142_v63 = vld [vmem:[%s1942_s27 + $0xd0] sm:$0xff]  ;;  %485 = vst [vmem:[%s2231_s25 + $0x68] sm:$0xff] %v2030_v30 }
  0x64   : > { %v676_v39 = vadd.f32 %v668_v52, %v650_v15  ;;  %v543_v45 = vadd.f32 %v1976_v6, %v533_v23  ;;  %v666_v47 = vmul.f32 %v2037_v33, %v2101_v20  ;;  %v532_v51 = vmul.f32 %v1969_v3, %v2106_v24  ;;  %v2139_v59 = vld [vmem:[%s1942_s27 + $0x158] sm:$0xff]  ;;  %v2145_v15 = vld [vmem:[%s1942_s27 + $0x48] sm:$0xff]  ;;  %473 = vst [vmem:[%s2231_s25 + $0x8] sm:$0xff] %v2134_v53  ;;  %v847_v24 = vld [vmem:[#allocation14 + $0x60] sm:$0xff] }
  0x65   : > { %703 = vmatpush.msra.mxu0 %v677_v27  ;;  %v560_v52 = vmul.f32 %v1989_v11, %v2109_v26  ;;  %v649_v54 = vadd.f32 %v641_v5, %v623_v40  ;;  %v622_v56 = vadd.f32 %v614_v13, %v596_v41  ;;  %v613_v58 = vmul.f32 %v2010_v21, %v2118_v38  ;;  %v2153_v18 = vld [vmem:[%s1942_s27 + $0x88] sm:$0xff]  ;;  %v2156_v40 = vld [vmem:[%s1942_s27 + $0x110] sm:$0xff]  ;;  %v2161_v41 = vld [vmem:[%s1942_s27] sm:$0xff] }
  0x66   : > { %v569_v57 = vadd.f32 %v561_v34, %v543_v45  ;;  %2466 = vst [vmem:[#allocation29_spill] sm:$0xff] %v2139_v59  ;;  %v639_v16 = vmul.f32 %v2024_v28, %v2122_v44  ;;  %v542_v5 = vadd.f32 %v1976_v6, %v532_v51  ;;  %v586_v13 = vmul.f32 %v2002_v17, %v2125_v46  ;;  %v2164_v45 = vld [vmem:[%s1942_s27 + $0x40] sm:$0xff] }
  0x67   : > { %704 = vmatpush.msra.mxu0 %v676_v39  ;;  %v675_v23 = vadd.f32 %v667_v8, %v649_v54  ;;  %v648_v27 = vadd.f32 %v640_v32, %v622_v56  ;;  %v531_v39 = vmul.f32 %v1969_v3, %v2134_v53  ;;  %v665_v51 = vmul.f32 %v2037_v33, %v2139_v59  ;;  %v2187_v59 = vld [vmem:[%s1942_s27 + $0x108] sm:$0xff]  ;;  %v859_v26 = vld [vmem:[#allocation14 + $0xc0] sm:$0xff] }
  0x68   : > { %v595_v34 = vadd.f32 %v587_v35, %v569_v57  ;;  %v568_v29 = vadd.f32 %v560_v52, %v542_v5  ;;  %v612_v8 = vmul.f32 %v2010_v21, %v2142_v63  ;;  %v559_v32 = vmul.f32 %v1989_v11, %v2145_v15  ;;  %v2173_v35 = vld [vmem:[%s1942_s27 + $0xc8] sm:$0xff]  ;;  %v2176_v57 = vld [vmem:[%s1942_s27 + $0x150] sm:$0xff]  ;;  %v2182_v5 = vld [vmem:[%s1942_s27 + $0x80] sm:$0xff]  ;;  %472 = vst [vmem:[%s2231_s25] sm:$0xff] %v2161_v41 }
  0x69   : > { %705 = vmatpush.msra.mxu0 %v675_v23  ;;  %v674_v54 = vadd.f32 %v666_v47, %v648_v27  ;;  %2467 = vst [vmem:[#allocation30_spill] sm:$0xff] %v2176_v57  ;;  %v541_v36 = vadd.f32 %v1976_v6, %v531_v39  ;;  %v585_v52 = vmul.f32 %v2002_v17, %v2153_v18  ;;  %v2196_v39 = vld [vmem:[%s1942_s27 + $0xc0] sm:$0xff] }
  0x6a   : > { %v621_v56 = vadd.f32 %v613_v58, %v595_v34  ;;  %v594_v49 = vadd.f32 %v586_v13, %v568_v29  ;;  %v638_v20 = vmul.f32 %v2024_v28, %v2156_v40  ;;  %v530_v47 = vmul.f32 %v1969_v3, %v2161_v41  ;;  %480 = vst [vmem:[%s2231_s25 + $0x40] sm:$0xff] %v2164_v45  ;;  %v839_v53 = vld [vmem:[#allocation14 + $0x20] sm:$0xff]  ;;  %v841_v41 = vld [vmem:[#allocation14 + $0x30] sm:$0xff] }
  0x6b   : > { %v558_v58 = vmul.f32 %v1989_v11, %v2164_v45  ;;  %706 = vmatpush.msra.mxu0 %v674_v54  ;;  %v567_v27 = vadd.f32 %v559_v32, %v541_v36  ;;  %v611_v34 = vmul.f32 %v2010_v21, %v2173_v35  ;;  %v664_v13 = vmul.f32 %v2037_v33, %v2176_v57  ;;  %v2209_v32 = vld [vmem:[%s1942_s27 + $0x100] sm:$0xff]  ;;  %v738_v57 = vld [vmem:[#allocation10 + $0x70] sm:$0xff]  ;;  %v842_v45 = vld [vmem:[#allocation14 + $0x38] sm:$0xff] }
  0x6c   : > { %v647_v23 = vadd.f32 %v639_v16, %v621_v56  ;;  %v620_v29 = vadd.f32 %v612_v8, %v594_v49  ;;  %v540_v3 = vadd.f32 %v1976_v6, %v530_v47  ;;  %v584_v11 = vmul.f32 %v2002_v17, %v2182_v5  ;;  %v2216_v47 = vld [vmem:[%s1942_s27 + $0x140] sm:$0xff]  ;;  %481 = vst [vmem:[%s2231_s25 + $0x48] sm:$0xff] %v2145_v15  ;;  %v840_v15 = vld [vmem:[#allocation14 + $0x28] sm:$0xff]  ;;  %s1114_s27 = scalar_lea.sflag [#allocation5], %s1938_s0 }
  0x6d   : > { %v593_v16 = vadd.f32 %v585_v52, %v567_v27  ;;  %v637_v36 = vmul.f32 %v2024_v28, %v2187_v59  ;;  %v610_v49 = vmul.f32 %v2010_v21, %v2196_v39  ;;  %v663_v6 = vmul.f32 %v2037_v33, %v2201_v22  ;;  %v739_v27 = vld [vmem:[#allocation10 + $0x78] sm:$0xff]  ;;  %486 = vst [vmem:[%s2231_s25 + $0x70] sm:$0xff] %v1984_v9  ;;  %v2469_v9 = vld [vmem:[#allocation23_spill] sm:$0xff]  ;;  %v2471_v30 = vld [vmem:[#allocation29_spill] sm:$0xff] }
  0x6e   : > { %v673_v54 = vadd.f32 %v665_v51, %v647_v23  ;;  %v646_v56 = vadd.f32 %v638_v20, %v620_v29  ;;  %v566_v25 = vadd.f32 %v558_v58, %v540_v3  ;;  %v636_v52 = vmul.f32 %v2024_v28, %v2209_v32  ;;  %740 = vmatpush.msra.mxu1 %v739_v27  ;;  %v736_v3 = vld [vmem:[#allocation10 + $0x60] sm:$0xff]  ;;  %v735_v28 = vld [vmem:[#allocation10 + $0x58] sm:$0xff] }
  0x6f   : > { %v619_v8 = vadd.f32 %v611_v34, %v593_v16  ;;  %v662_v21 = vmul.f32 %v2037_v33, %v2216_v47  ;;  %v737_v34 = vld [vmem:[#allocation10 + $0x68] sm:$0xff]  ;;  %v732_v33 = vld [vmem:[#allocation10 + $0x40] sm:$0xff]  ;;  %v788_v27 = vld [vmem:[#allocation13 + $0x38] sm:$0xf]  ;;  %487 = vst [vmem:[%s2231_s25 + $0x78] sm:$0xff] %v1972_v4 }
  0x70   : > { %707 = vmatpush.msra.mxu0 %v673_v54  ;;  %v672_v17 = vadd.f32 %v664_v13, %v646_v56  ;;  %v592_v51 = vadd.f32 %v584_v11, %v566_v25  ;;  %741 = vmatpush.msra.mxu1 %v738_v57  ;;  %v678_v25 = vld [vmem:[#allocation8] sm:$0xff]  ;;  %v734_v11 = vld [vmem:[#allocation10 + $0x50] sm:$0xff]  ;;  %v733_v54 = vld [vmem:[#allocation10 + $0x48] sm:$0xff]  ;;  %488 = vst [vmem:[%s2231_s25 + $0x80] sm:$0xff] %v2182_v5 }
  0x71   : > { %v645_v23 = vadd.f32 %v637_v36, %v619_v8  ;;  %v679_v16 = vld [vmem:[#allocation8 + $0x8] sm:$0xff]  ;;  %v731_v36 = vld [vmem:[#allocation10 + $0x38] sm:$0xff]  ;;  %v730_v57 = vld [vmem:[#allocation10 + $0x30] sm:$0xff]  ;;  %489 = vst [vmem:[%s2231_s25 + $0x88] sm:$0xff] %v2153_v18 }
  0x72   : > { %708 = vmatpush.msra.mxu0 %v672_v17  ;;  %v618_v20 = vadd.f32 %v610_v49, %v592_v51  ;;  %742 = vmatpush.msra.mxu1 %v737_v34  ;;  %v729_v56 = vld [vmem:[#allocation10 + $0x28] sm:$0xff]  ;;  %v728_v49 = vld [vmem:[#allocation10 + $0x20] sm:$0xff]  ;;  %v680_v8 = vld [vmem:[#allocation8 + $0x10] sm:$0xff]  ;;  %490 = vst [vmem:[%s2231_s25 + $0x90] sm:$0xff] %v2125_v46 }
  0x73   : > { %v671_v58 = vadd.f32 %v663_v6, %v645_v23  ;;  %v727_v6 = vld [vmem:[#allocation10 + $0x18] sm:$0xff]  ;;  %v726_v17 = vld [vmem:[#allocation10 + $0x10] sm:$0xff]  ;;  %v725_v51 = vld [vmem:[#allocation10 + $0x8] sm:$0xff]  ;;  %491 = vst [vmem:[%s2231_s25 + $0x98] sm:$0xff] %v2092_v62 }
  0x74   : > { %v644_v29 = vadd.f32 %v636_v52, %v618_v20  ;;  %743 = vmatpush.msra.mxu1 %v736_v3  ;;  %v681_v52 = vld [vmem:[#allocation8 + $0x18] sm:$0x3f]  ;;  %v724_v23 = vld [vmem:[#allocation10] sm:$0xff]  ;;  %v787_v20 = vld [vmem:[#allocation13 + $0x30] sm:$0xff]  ;;  %492 = vst [vmem:[%s2231_s25 + $0xa0] sm:$0xff] %v2056_v43 }
  0x75   : > { %709 = vmatpush.msra.mxu0 %v671_v58  ;;  %v785_v58 = vld [vmem:[#allocation13 + $0x20] sm:$0xff]  ;;  %v784_v34 = vld [vmem:[#allocation13 + $0x18] sm:$0xff]  ;;  %v783_v3 = vld [vmem:[#allocation13 + $0x10] sm:$0xff]  ;;  %493 = vst [vmem:[%s2231_s25 + $0xa8] sm:$0xff] %v2033_v31 }
  0x76   : > { %v670_v13 = vadd.f32 %v662_v21, %v644_v29  ;;  %744 = vmatpush.msra.mxu1 %v735_v28  ;;  %v786_v21 = vld [vmem:[#allocation13 + $0x28] sm:$0xff]  ;;  %494 = vst [vmem:[%s2231_s25 + $0xb0] sm:$0xff] %v1987_v10  ;;  %v855_v4 = vld [vmem:[#allocation14 + $0xa0] sm:$0xff]  ;;  %v2474_v43 = vld [vmem:[#allocation26_spill] sm:$0xff] }
  0x77   : > { %495 = vst [vmem:[%s2231_s25 + $0xb8] sm:$0xff] %v1979_v7  ;;  %v2468_v7 = vld [vmem:[#allocation24_spill] sm:$0xff]  ;;  %v837_v62 = vld [vmem:[#allocation14 + $0x10] sm:$0xff]  ;;  %v850_v18 = vld [vmem:[#allocation14 + $0x78] sm:$0xff] }
  0x78   : > { %710 = vmatpush.msra.mxu0 %v670_v13  ;;  %745 = vmatpush.msra.mxu1 %v734_v11  ;;  %v782_v13 = vld [vmem:[#allocation13 + $0x8] sm:$0xff]  ;;  %496 = vst [vmem:[%s2231_s25 + $0xc0] sm:$0xff] %v2196_v39  ;;  %v863_v5 = vld [vmem:[#allocation14 + $0xe0] sm:$0xff] }
  0x79   : > { %1284 = vmatmul.msk.f32.vlgmr.msra.gmra.mxu0 %vm682_vm0, %v678_v25  ;;  %497 = vst [vmem:[%s2231_s25 + $0xc8] sm:$0xff] %v2173_v35  ;;  %v844_v10 = vld [vmem:[#allocation14 + $0x48] sm:$0xff]  ;;  %v851_v35 = vld [vmem:[#allocation14 + $0x80] sm:$0xff] }
  0x7a   : > { %746 = vmatpush.msra.mxu1 %v733_v54  ;;  %v781_v54 = vld [vmem:[#allocation13] sm:$0xff]  ;;  %498 = vst [vmem:[%s2231_s25 + $0xd0] sm:$0xff] %v2142_v63  ;;  %v2472_v31 = vld [vmem:[#allocation28_spill] sm:$0xff]  ;;  %v861_v63 = vld [vmem:[#allocation14 + $0xd0] sm:$0xff] }
  0x7b   : > { %499 = vst [vmem:[%s2231_s25 + $0xd8] sm:$0xff] %v2118_v38  ;;  %v838_v38 = vld [vmem:[#allocation14 + $0x18] sm:$0xff]  ;;  %v860_v46 = vld [vmem:[#allocation14 + $0xc8] sm:$0xff] }
  0x7c   : > { %747 = vmatpush.msra.mxu1 %v732_v33  ;;  %500 = vst [vmem:[%s2231_s25 + $0xe0] sm:$0xff] %v2071_v50  ;;  %v857_v50 = vld [vmem:[#allocation14 + $0xb0] sm:$0xff]  ;;  %v852_v39 = vld [vmem:[#allocation14 + $0x88] sm:$0xff] }
  0x7d   : > { %501 = vst [vmem:[%s2231_s25 + $0xe8] sm:$0xff] %v2045_v37  ;;  %v835_v37 = vld [vmem:[#allocation14] sm:$0xff] }
  0x7e   : > { %748 = vmatpush.msra.mxu1 %v731_v36  ;;  %502 = vst [vmem:[%s2231_s25 + $0xf0] sm:$0xff] %v2006_v19  ;;  %v2470_v19 = vld [vmem:[#allocation30_spill] sm:$0xff] }
  0x7f   : > { %503 = vst [vmem:[%s2231_s25 + $0xf8] sm:$0xff] %v1992_v12  ;;  %v856_v12 = vld [vmem:[#allocation14 + $0xa8] sm:$0xff] }
  0x80   : > { %749 = vmatpush.msra.mxu1 %v730_v57  ;;  %504 = vst [vmem:[%s2231_s25 + $0x100] sm:$0xff] %v2209_v32  ;;  %v864_v32 = vld [vmem:[#allocation14 + $0xe8] sm:$0xff] }
  0x81   : > { %1285 = vmatmul.msk.f32.gmra.mxu0 %vm682_vm0, %v679_v16  ;;  %v773_v16 = vld [vmem:[#allocation11] sm:$0xff]  ;;  %505 = vst [vmem:[%s2231_s25 + $0x108] sm:$0xff] %v2187_v59  ;;  %v849_v59 = vld [vmem:[#allocation14 + $0x70] sm:$0xff] }
  0x82   : > { %750 = vmatpush.msra.mxu1 %v729_v56  ;;  %506 = vst [vmem:[%s2231_s25 + $0x110] sm:$0xff] %v2156_v40  ;;  %v862_v40 = vld [vmem:[#allocation14 + $0xd8] sm:$0xff] }
  0x83   : > { %507 = vst [vmem:[%s2231_s25 + $0x118] sm:$0xff] %v2122_v44  ;;  %v848_v44 = vld [vmem:[#allocation14 + $0x68] sm:$0xff] }
  0x84   : > { %751 = vmatpush.msra.mxu1 %v728_v49  ;;  %v774_v49 = vld [vmem:[#allocation11 + $0x8] sm:$0xff]  ;;  %508 = vst [vmem:[%s2231_s25 + $0x120] sm:$0xff] %v2086_v60  ;;  %v846_v60 = vld [vmem:[#allocation14 + $0x58] sm:$0xff] }
  0x85   : > { %509 = vst [vmem:[%s2231_s25 + $0x128] sm:$0xff] %v2065_v48  ;;  %v845_v48 = vld [vmem:[#allocation14 + $0x50] sm:$0xff] }
  0x86   : > { %752 = vmatpush.msra.mxu1 %v727_v6  ;;  %510 = vst [vmem:[%s2231_s25 + $0x130] sm:$0xff] %v2468_v7 }
  0x87   : > { %511 = vst [vmem:[%s2231_s25 + $0x138] sm:$0xff] %v2469_v9 }
  0x88   : > { %753 = vmatpush.msra.mxu1 %v726_v17  ;;  %512 = vst [vmem:[%s2231_s25 + $0x140] sm:$0xff] %v2216_v47  ;;  %v853_v47 = vld [vmem:[#allocation14 + $0x90] sm:$0xff] }
  0x89   : > { %1286 = vmatmul.msk.f32.gmra.mxu0 %vm682_vm0, %v680_v8  ;;  %513 = vst [vmem:[%s2231_s25 + $0x148] sm:$0xff] %v2201_v22  ;;  %v2475_v22 = vld [vmem:[#allocation25_spill] sm:$0xff] }
  0x8a   : > { %754 = vmatpush.msra.mxu1 %v725_v51  ;;  %v775_v51 = vld [vmem:[#allocation11 + $0x10] sm:$0xff]  ;;  %514 = vst [vmem:[%s2231_s25 + $0x150] sm:$0xff] %v2470_v19 }
  0x8b   : > { %515 = vst [vmem:[%s2231_s25 + $0x158] sm:$0xff] %v2471_v30 }
  0x8c   : > { %755 = vmatpush.msra.mxu1 %v724_v23  ;;  %516 = vst [vmem:[%s2231_s25 + $0x160] sm:$0xff] %v2472_v31 }
  0x8d   : > { %517 = vst [vmem:[%s2231_s25 + $0x168] sm:$0xff] %v2473_v42 }
  0x8e   : > { %1288 = vmatpush.msk.msrb.mxu1 %vm802_vm1, %v788_v27  ;;  %518 = vst [vmem:[%s2231_s25 + $0x170] sm:$0xff] %v2474_v43 }
  0x8f   : > { %519 = vst [vmem:[%s2231_s25 + $0x178] sm:$0xff] %v2475_v22 }
  0x90   : > { %815 = vmatpush.msrb.mxu1 %v787_v20  ;;  %v776_v20 = vld [vmem:[#allocation11 + $0x18] sm:$0x3f] }
  0x91   : > { %1287 = vmatmul.msk.f32.gmra.mxu0 %vm682_vm0, %v681_v52 }
  0x92   : > { %816 = vmatpush.msrb.mxu1 %v786_v21 }
  0x94   : > { %817 = vmatpush.msrb.mxu1 %v785_v58 }
  0x96   : > { %818 = vmatpush.msrb.mxu1 %v784_v34 }
  0x98   : > { %819 = vmatpush.msrb.mxu1 %v783_v3  ;;  %v854_v3 = vld [vmem:[#allocation14 + $0x98] sm:$0xff] }
  0x9a   : > { %820 = vmatpush.msrb.mxu1 %v782_v13  ;;  %v866_v13 = vld [vmem:[#allocation14 + $0xf8] sm:$0xff] }
  0x9c   : > { %821 = vmatpush.msrb.mxu1 %v781_v54 }
  0xf6   : > { %v712_v29 = vpop.f32.mrf.mxu0 }
  0xf7   : > { %756 = vmatmul.f32.vlgmr.msra.gmra.mxu1 %v712_v29  ;;  %v865_v29 = vld [vmem:[#allocation14 + $0xf0] sm:$0xff] }
  0xfe   : > { %v715_v25 = vpop.f32.mrf.mxu0 }
  0xff   : > { %759 = vmatmul.f32.gmra.mxu1 %v715_v25 }
 0x106   : > { %v718_v28 = vpop.f32.mrf.mxu0 }
 0x107   : > { %762 = vmatmul.f32.gmra.mxu1 %v718_v28 }
 0x10e   : > { %v721_v11 = vpop.f32.mrf.mxu0 }
 0x10f   : > { %765 = vmatmul.f32.gmra.mxu1 %v721_v11 }
 0x174   : > { %v757_v33 = vpop.f32.mrf.mxu1 }
 0x175   : > { %v769_v36 = vmax.f32 %v757_v33, 0.0 }
 0x177   : > { %v777_v57 = vmul.f32 %v773_v16, %v769_v36 }
 0x179   : > { %1289 = vmatmul.msk.f32.vlgmr.msrb.gmra.mxu1 %vm789_vm2, %v777_v57 }
 0x17c   : > { %v760_v56 = vpop.f32.mrf.mxu1 }
 0x17d   : > { %v770_v8 = vmax.f32 %v760_v56, 0.0 }
 0x17f   : > { %v778_v6 = vmul.f32 %v774_v49, %v770_v8 }
 0x181   : > { %1290 = vmatmul.msk.f32.gmra.mxu1 %vm789_vm2, %v778_v6 }
 0x184   : > { %v763_v17 = vpop.f32.mrf.mxu1 }
 0x185   : > { %v771_v52 = vmax.f32 %v763_v17, 0.0 }
 0x187   : > { %v779_v23 = vmul.f32 %v775_v51, %v771_v52 }
 0x189   : > { %1291 = vmatmul.msk.f32.gmra.mxu1 %vm789_vm2, %v779_v23 }
 0x18c   : > { %v766_v27 = vpop.f32.mrf.mxu1 }
 0x18d   : > { %v772_v21 = vmax.f32 %v766_v27, 0.0 }
 0x18f   : > { %v780_v58 = vmul.f32 %v776_v20, %v772_v21 }
 0x191   : > { %1292 = vmatmul.msk.f32.gmra.mxu1 %vm789_vm2, %v780_v58 }
 0x1f6   : > { %v823_v34 = vpop.f32.mrf.mxu1 }
 0x1fe   : > { %v826_v14 = vpop.f32.mrf.mxu1 }
 0x206   : > { %v829_v0 = vpop.f32.mrf.mxu1 }
 0x20e   : > { %v832_v1 = vpop.f32.mrf.mxu1 }
 0x20f   : > { %1293 = vmatpush.msk.msrb.mxu0 %vm964_vm3, %v832_v1  ;;  %1329 = vmatpush.msk.msra.mxu1 %vm964_vm3, %v832_v1 }
 0x210   : > { %1330 = vmatpush.msk.msra.mxu2 %vm964_vm3, %v832_v1  ;;  %1331 = vmatpush.msk.msra.mxu3 %vm964_vm3, %v832_v1 }
 0x211   : > { %981 = vmatpush.msrb.mxu0 %v829_v0  ;;  %1332 = vmatpush.msra.mxu1 %v829_v0 }
 0x212   : > { %1333 = vmatpush.msra.mxu2 %v829_v0  ;;  %1334 = vmatpush.msra.mxu3 %v829_v0 }
 0x213   : > { %982 = vmatpush.msrb.mxu0 %v826_v14  ;;  %1335 = vmatpush.msra.mxu1 %v826_v14 }
 0x214   : > { %1336 = vmatpush.msra.mxu2 %v826_v14  ;;  %1337 = vmatpush.msra.mxu3 %v826_v14 }
 0x215   : > { %983 = vmatpush.msrb.mxu0 %v823_v34  ;;  %1338 = vmatpush.msra.mxu1 %v823_v34 }
 0x216   : > { %1339 = vmatpush.msra.mxu2 %v823_v34  ;;  %1340 = vmatpush.msra.mxu3 %v823_v34 }
 0x217   : > { %1302 = vmatmul.msk.f32.vlgmr.msra.gmra.mxu2 %vm867_vm4, %v843_v2  ;;  %1314 = vmatmul.msk.f32.vlgmr.msra.gmra.mxu3 %vm867_vm4, %v855_v4 }
 0x218   : > { %1294 = vmatmul.msk.f32.vlgmr.msrb.gmra.mxu0 %vm867_vm4, %v835_v37  ;;  %1301 = vmatmul.msk.f32.vlgmr.msra.gmra.mxu1 %vm867_vm4, %v842_v45 }
 0x21f   : > { %1303 = vmatmul.msk.f32.gmra.mxu2 %vm867_vm4, %v844_v10  ;;  %1315 = vmatmul.msk.f32.gmra.mxu3 %vm867_vm4, %v856_v12 }
 0x220   : > { %1295 = vmatmul.msk.f32.gmra.mxu0 %vm867_vm4, %v836_v55 }
 0x227   : > { %1304 = vmatmul.msk.f32.gmra.mxu2 %vm867_vm4, %v845_v48  ;;  %1316 = vmatmul.msk.f32.gmra.mxu3 %vm867_vm4, %v857_v50 }
 0x228   : > { %1296 = vmatmul.msk.f32.gmra.mxu0 %vm867_vm4, %v837_v62 }
 0x22f   : > { %1305 = vmatmul.msk.f32.gmra.mxu2 %vm867_vm4, %v846_v60  ;;  %1317 = vmatmul.msk.f32.gmra.mxu3 %vm867_vm4, %v858_v61 }
 0x230   : > { %1297 = vmatmul.msk.f32.gmra.mxu0 %vm867_vm4, %v838_v38 }
 0x237   : > { %1306 = vmatmul.msk.f32.gmra.mxu2 %vm867_vm4, %v847_v24  ;;  %1318 = vmatmul.msk.f32.gmra.mxu3 %vm867_vm4, %v859_v26 }
 0x238   : > { %1298 = vmatmul.msk.f32.gmra.mxu0 %vm867_vm4, %v839_v53 }
 0x23f   : > { %1307 = vmatmul.msk.f32.gmra.mxu2 %vm867_vm4, %v848_v44  ;;  %1319 = vmatmul.msk.f32.gmra.mxu3 %vm867_vm4, %v860_v46 }
 0x240   : > { %1299 = vmatmul.msk.f32.gmra.mxu0 %vm867_vm4, %v840_v15 }
 0x247   : > { %1308 = vmatmul.msk.f32.gmra.mxu2 %vm867_vm4, %v849_v59  ;;  %1320 = vmatmul.msk.f32.gmra.mxu3 %vm867_vm4, %v861_v63 }
 0x248   : > { %1300 = vmatmul.msk.f32.gmra.mxu0 %vm867_vm4, %v841_v41 }
 0x24f   : > { %1309 = vmatmul.msk.f32.gmra.mxu2 %vm867_vm4, %v850_v18  ;;  %1321 = vmatmul.msk.f32.gmra.mxu3 %vm867_vm4, %v862_v40 }
 0x257   : > { %1310 = vmatmul.msk.f32.gmra.mxu2 %vm867_vm4, %v851_v35  ;;  %1322 = vmatmul.msk.f32.gmra.mxu3 %vm867_vm4, %v863_v5 }
 0x25f   : > { %1311 = vmatmul.msk.f32.gmra.mxu2 %vm867_vm4, %v852_v39  ;;  %1323 = vmatmul.msk.f32.gmra.mxu3 %vm867_vm4, %v864_v32 }
 0x267   : > { %1312 = vmatmul.msk.f32.gmra.mxu2 %vm867_vm4, %v853_v47  ;;  %1324 = vmatmul.msk.f32.gmra.mxu3 %vm867_vm4, %v865_v29 }
 0x26f   : > { %1313 = vmatmul.msk.f32.gmra.mxu2 %vm867_vm4, %v854_v3  ;;  %1325 = vmatmul.msk.f32.gmra.mxu3 %vm867_vm4, %v866_v13 }
 0x295   : > { %v985_v11 = vpop.f32.mrf.mxu0  ;;  %v1006_v14 = vpop.f32.mrf.mxu1 }
 0x296   : > { %1081 = vst [vmem:[%s2231_s25 + $0x180] sm:$0xff] %v985_v11 }
 0x297   : > { %1088 = vst [vmem:[%s2231_s25 + $0x1b8] sm:$0xff] %v1006_v14 }
 0x29a   : > { %v1009_v25 = vpop.f32.mrf.mxu2  ;;  %v1045_v28 = vpop.f32.mrf.mxu3 }
 0x29b   : > { %1089 = vst [vmem:[%s2231_s25 + $0x1c0] sm:$0xff] %v1009_v25 }
 0x29c   : > { %1101 = vst [vmem:[%s2231_s25 + $0x220] sm:$0xff] %v1045_v28 }
 0x29d   : > { %v988_v16 = vpop.f32.mrf.mxu0 }
 0x29e   : > { %1082 = vst [vmem:[%s2231_s25 + $0x188] sm:$0xff] %v988_v16 }
 0x2a2   : > { %v1012_v54 = vpop.f32.mrf.mxu2  ;;  %v1048_v33 = vpop.f32.mrf.mxu3 }
 0x2a3   : > { %1090 = vst [vmem:[%s2231_s25 + $0x1c8] sm:$0xff] %v1012_v54 }
 0x2a4   : > { %1102 = vst [vmem:[%s2231_s25 + $0x228] sm:$0xff] %v1048_v33 }
 0x2a5   : > { %v991_v56 = vpop.f32.mrf.mxu0 }
 0x2a6   : > { %1083 = vst [vmem:[%s2231_s25 + $0x190] sm:$0xff] %v991_v56 }
 0x2aa   : > { %v1015_v36 = vpop.f32.mrf.mxu2  ;;  %v1051_v57 = vpop.f32.mrf.mxu3 }
 0x2ab   : > { %1091 = vst [vmem:[%s2231_s25 + $0x1d0] sm:$0xff] %v1015_v36 }
 0x2ac   : > { %1103 = vst [vmem:[%s2231_s25 + $0x230] sm:$0xff] %v1051_v57 }
 0x2ad   : > { %v994_v6 = vpop.f32.mrf.mxu0 }
 0x2ae   : > { %1084 = vst [vmem:[%s2231_s25 + $0x198] sm:$0xff] %v994_v6 }
 0x2b2   : > { %v1018_v49 = vpop.f32.mrf.mxu2  ;;  %v1054_v8 = vpop.f32.mrf.mxu3 }
 0x2b3   : > { %1092 = vst [vmem:[%s2231_s25 + $0x1d8] sm:$0xff] %v1018_v49 }
 0x2b4   : > { %1104 = vst [vmem:[%s2231_s25 + $0x238] sm:$0xff] %v1054_v8 }
 0x2b5   : > { %v997_v52 = vpop.f32.mrf.mxu0 }
 0x2b6   : > { %1085 = vst [vmem:[%s2231_s25 + $0x1a0] sm:$0xff] %v997_v52 }
 0x2ba   : > { %v1021_v17 = vpop.f32.mrf.mxu2  ;;  %v1057_v51 = vpop.f32.mrf.mxu3 }
 0x2bb   : > { %1093 = vst [vmem:[%s2231_s25 + $0x1e0] sm:$0xff] %v1021_v17 }
 0x2bc   : > { %1105 = vst [vmem:[%s2231_s25 + $0x240] sm:$0xff] %v1057_v51 }
 0x2bd   : > { %v1000_v20 = vpop.f32.mrf.mxu0 }
 0x2be   : > { %1086 = vst [vmem:[%s2231_s25 + $0x1a8] sm:$0xff] %v1000_v20 }
 0x2c2   : > { %v1024_v23 = vpop.f32.mrf.mxu2  ;;  %v1060_v27 = vpop.f32.mrf.mxu3 }
 0x2c3   : > { %1094 = vst [vmem:[%s2231_s25 + $0x1e8] sm:$0xff] %v1024_v23 }
 0x2c4   : > { %1106 = vst [vmem:[%s2231_s25 + $0x248] sm:$0xff] %v1060_v27 }
 0x2c5   : > { %v1003_v34 = vpop.f32.mrf.mxu0 }
 0x2c6   : > { %1087 = vst [vmem:[%s2231_s25 + $0x1b0] sm:$0xff] %v1003_v34 }
 0x2ca   : > { %v1027_v21 = vpop.f32.mrf.mxu2  ;;  %v1063_v58 = vpop.f32.mrf.mxu3 }
 0x2cb   : > { %1095 = vst [vmem:[%s2231_s25 + $0x1f0] sm:$0xff] %v1027_v21 }
 0x2cc   : > { %1107 = vst [vmem:[%s2231_s25 + $0x250] sm:$0xff] %v1063_v58 }
 0x2d2   : > { %v1030_v0 = vpop.f32.mrf.mxu2  ;;  %v1066_v1 = vpop.f32.mrf.mxu3 }
 0x2d3   : > { %1096 = vst [vmem:[%s2231_s25 + $0x1f8] sm:$0xff] %v1030_v0 }
 0x2d4   : > { %1108 = vst [vmem:[%s2231_s25 + $0x258] sm:$0xff] %v1066_v1 }
 0x2da   : > { %v1033_v2 = vpop.f32.mrf.mxu2  ;;  %v1069_v4 = vpop.f32.mrf.mxu3 }
 0x2db   : > { %1097 = vst [vmem:[%s2231_s25 + $0x200] sm:$0xff] %v1033_v2 }
 0x2dc   : > { %1109 = vst [vmem:[%s2231_s25 + $0x260] sm:$0xff] %v1069_v4 }
 0x2e2   : > { %v1036_v7 = vpop.f32.mrf.mxu2  ;;  %v1072_v9 = vpop.f32.mrf.mxu3 }
 0x2e3   : > { %1098 = vst [vmem:[%s2231_s25 + $0x208] sm:$0xff] %v1036_v7 }
 0x2e4   : > { %1110 = vst [vmem:[%s2231_s25 + $0x268] sm:$0xff] %v1072_v9 }
 0x2ea   : > { %v1039_v10 = vpop.f32.mrf.mxu2  ;;  %v1075_v12 = vpop.f32.mrf.mxu3 }
 0x2eb   : > { %1099 = vst [vmem:[%s2231_s25 + $0x210] sm:$0xff] %v1039_v10 }
 0x2ec   : > { %1111 = vst [vmem:[%s2231_s25 + $0x270] sm:$0xff] %v1075_v12 }
 0x2f2   : > { %v1042_v19 = vpop.f32.mrf.mxu2  ;;  %v1078_v30 = vpop.f32.mrf.mxu3 }
 0x2f3   : > { %1100 = vst [vmem:[%s2231_s25 + $0x218] sm:$0xff] %v1042_v19 }
 0x2f4   : > { %1112 = vst [vmem:[%s2231_s25 + $0x278] sm:$0xff] %v1078_v30 }
 0x2f5   : > { %1679 = shalt.err (!%p1676_p9)
}
 0x2f6   : > { %s1744_s0 = smov 128   ;;  %s1745_s17 = smov 8  }
 0x2f7   : > { %1372 = dma.vmem_to_hbm [thread:$0]  (%p1902_p4), %s1127_s3, 10240, %s1129_s4, %s1114_s27, %s1744_s0, %s1744_s0, %s1745_s17  }
 0x2f8 PF: > { %s1143_s12 = sand.u32 1, %s1722_s29   ;;  %p2476_p10 = scmp.ge.s32.totalorder %s1734_s10, 2 }
 0x2f9   : > { %s1144_s25 = scalar_lea.sflag [#allocation5], %s1143_s12 }
 0x2fa   : > { %p1398_p11 = pnand %p2476_p10, %p1906_p6 }
 0x2fc   : > { %p1399_p13 = pneg %p1398_p11 }
 0x2fe   : > { %1717 = dma.done.wait (%p1399_p13), %s1144_s25, 10240  }
 0x2ff   : > { %1719 = vsyncadd (%p1399_p13), %s1144_s25, 4294957056  ;;  %p26_p0 = scmp.ge.s32.totalorder %s1880_s15, 4   ;;  %s2477_s29 = smov %s1726_s30 }
 0x300   : > { %s2478_s30 = smov %s1730_s9  ;;  %s2479_s9 = smov %s1891_s16 }
 0x301   : > { %s2480_s10 = smov %s1880_s15  ;;  %28 = sbr.rel (!%p26_p0) target bundleno = 14 (0xe), region = 122 }
 0x306   :  { %1150 = vsyncpa [#allocation4], 1 }
 0x307   :  { %1152 = vsyncpa [#allocation4 + $0x1], 1 }
 0x308   :  { %1153 = vsyncpa [#allocation9], 1 }
 0x309   :  { %1154 = vsyncpa [#allocation12], 1 }
 0x30a   :  { %1155 = vsyncpa [#allocation15], 1 }
 0x30b   :  { %1156 = vsyncpa [#allocation5], 1 }
 0x30c   :  { %1158 = vsyncpa [#allocation5 + $0x1], 1 }
 0x30d   :  { %1159 = vsyncpa [#allocation6], 1 }
 0x30e   :  { %1161 = vsyncpa [#allocation6 + $0x1], 1 }

</bundles_post_ra>
